<compile_context>
chip_gen: v5e
topology: v5e:2x2
jax: 0.10.0
libtpu: 0.0.40
codegen_flags: <defaults>
</compile_context>

<pallas_src>
import functools

import jax
import jax.numpy as jnp
from jax.experimental import pallas as pl
from jax.experimental.pallas import tpu as pltpu


def _round_up(x, m):
    return (x + m - 1) // m * m


def _layer_norm_f32(z, gamma_f32, beta_f32, eps):
    mean = jnp.mean(z, axis=-1, keepdims=True)
    zc = z - mean
    var = jnp.mean(zc * zc, axis=-1, keepdims=True)   # biased, like torch
    inv = jax.lax.rsqrt(var + eps)
    return zc * inv * gamma_f32 + beta_f32


def _ffn_kernel_single(x_ref, w1_ref, b1_ref, w2_ref, b2_ref, g_ref, beta_ref,
                       o_ref, *, eps):
    """Whole feed_dim resident in VMEM: fully fused, no accumulator scratch."""
    x = x_ref[...]                                     # (tm, d_model)
    h = jnp.dot(x, w1_ref[...], preferred_element_type=jnp.float32)
    h = jnp.maximum(h + b1_ref[...].astype(jnp.float32), 0.0)
    y = jnp.dot(h.astype(x_ref.dtype), w2_ref[...],
                preferred_element_type=jnp.float32)
    y = y + b2_ref[...].astype(jnp.float32)
    # TODO(synk): dropout is identity (inference / eval mode); training-time
    # masking via pltpu.prng_random_bits is not implemented here.
    z = y + x.astype(jnp.float32)                      # residual add
    out = _layer_norm_f32(z, g_ref[...].astype(jnp.float32),
                          beta_ref[...].astype(jnp.float32), eps)
    o_ref[...] = out.astype(o_ref.dtype)


def _ffn_kernel_split(x_ref, w1_ref, b1_ref, w2_ref, b2_ref, g_ref, beta_ref,
                      o_ref, acc_ref, *, eps):
    """feed_dim tiled; second matmul accumulates into an f32 scratch."""
    j = pl.program_id(1)                               # hidden-dim step

    @pl.when(j == 0)
    def _init():
        acc_ref[...] = jnp.zeros_like(acc_ref)

    x = x_ref[...]                                     # (tm, d_model), resident

    # linear1 chunk + ReLU: (tm, tf), f32 accumulation on the MXU.
    h = jnp.dot(x, w1_ref[...], preferred_element_type=jnp.float32)
    h = jnp.maximum(h + b1_ref[...].astype(jnp.float32), 0.0)

    # linear2 chunk, accumulated into the f32 scratch; the MXU sees the
    # narrow input dtype while the accumulator stays f32.
    acc_ref[...] += jnp.dot(h.astype(x_ref.dtype), w2_ref[...],
                            preferred_element_type=jnp.float32)

    @pl.when(j == pl.num_programs(1) - 1)
    def _finalize():
        # TODO(synk): dropout is identity (inference / eval mode).
        y = acc_ref[...] + b2_ref[...].astype(jnp.float32)
        z = y + x.astype(jnp.float32)                  # residual add
        out = _layer_norm_f32(z, g_ref[...].astype(jnp.float32),
                              beta_ref[...].astype(jnp.float32), eps)
        o_ref[...] = out.astype(o_ref.dtype)


def feed_forward(x, w1, b1, w2, b2, gamma, beta, *, eps=1e-5, tm=256, tf=512):
    """x: (batch, seq, d_model) -> (batch, seq, d_model)."""
    batch, seq, d_model = x.shape
    feed_dim = w1.shape[1]
    m = batch * seq
    itemsize = jnp.dtype(x.dtype).itemsize

    # Effective tiles: large row tiles for MXU/HBM efficiency, never larger
    # than the (padded) problem.  tm multiple of 8, tf multiple of 128.
    tm_eff = min(_round_up(tm, 8), _round_up(m, 8))
    tf_eff = min(_round_up(tf, 128), _round_up(feed_dim, 128))
    m_pad = _round_up(m, tm_eff)
    feed_pad = _round_up(feed_dim, tf_eff)

    # Zero-pad ragged dims.
    x2 = x.reshape(m, d_model)
    if m_pad != m:
        x2 = jnp.pad(x2, ((0, m_pad - m), (0, 0)))
    if feed_pad != feed_dim:
        w1 = jnp.pad(w1, ((0, 0), (0, feed_pad - feed_dim)))
        b1 = jnp.pad(b1, ((0, feed_pad - feed_dim),))
        w2 = jnp.pad(w2, ((0, feed_pad - feed_dim), (0, 0)))

    b1_2 = b1.reshape(1, feed_pad)
    b2_2 = b2.reshape(1, d_model)
    g_2 = gamma.reshape(1, d_model)
    beta_2 = beta.reshape(1, d_model)

    n_row = m_pad // tm_eff
    n_hid = feed_pad // tf_eff

    cost = pl.CostEstimate(
        flops=4 * m_pad * d_model * feed_pad,
        transcendentals=m_pad,
        bytes_accessed=itemsize * (2 * m_pad * d_model
                                   + 2 * d_model * feed_pad
                                   + feed_pad + 3 * d_model))

    if n_hid == 1:
        # Fully fused single-pass path (no reduction grid axis, no scratch).
        vmem_est = (2 * itemsize * (tm_eff * d_model            # x tile
                                    + d_model * feed_pad        # w1
                                    + feed_pad                  # b1
                                    + feed_pad * d_model        # w2
                                    + 3 * d_model               # b2, gamma, beta
                                    + tm_eff * d_model)         # out tile
                    + 4 * tm_eff * feed_pad                     # f32 hidden
                    + 4 * tm_eff * d_model)                     # f32 temporaries
        vmem_limit = min(max(int(vmem_est * 1.5) + (2 << 20), 32 << 20), 64 << 20)

        out2 = pl.pallas_call(
            functools.partial(_ffn_kernel_single, eps=eps),
            out_shape=jax.ShapeDtypeStruct((m_pad, d_model), x.dtype),
            grid_spec=pltpu.PrefetchScalarGridSpec(
                num_scalar_prefetch=0,
                grid=(n_row,),
                in_specs=[
                    pl.BlockSpec((tm_eff, d_model), lambda i: (i, 0)),      # x
                    pl.BlockSpec((d_model, feed_pad), lambda i: (0, 0)),    # w1
                    pl.BlockSpec((1, feed_pad), lambda i: (0, 0)),          # b1
                    pl.BlockSpec((feed_pad, d_model), lambda i: (0, 0)),    # w2
                    pl.BlockSpec((1, d_model), lambda i: (0, 0)),           # b2
                    pl.BlockSpec((1, d_model), lambda i: (0, 0)),           # gamma
                    pl.BlockSpec((1, d_model), lambda i: (0, 0)),           # beta
                ],
                out_specs=pl.BlockSpec((tm_eff, d_model), lambda i: (i, 0)),
            ),
            compiler_params=pltpu.CompilerParams(
                dimension_semantics=("parallel",),
                vmem_limit_bytes=vmem_limit),
            cost_estimate=cost,
        )(x2, w1, b1_2, w2, b2_2, g_2, beta_2)
    else:
        # Hidden-dim tiled reduction path with f32 accumulator scratch.
        vmem_est = (2 * itemsize * (tm_eff * d_model            # x tile
                                    + d_model * tf_eff          # w1 tile
                                    + tf_eff                    # b1 tile
                                    + tf_eff * d_model          # w2 tile
                                    + 3 * d_model               # b2, gamma, beta
                                    + tm_eff * d_model)         # out tile
                    + 4 * tm_eff * tf_eff                       # f32 hidden chunk
                    + 4 * tm_eff * d_model)                     # f32 accumulator
        vmem_limit = min(max(int(vmem_est * 1.5) + (2 << 20), 32 << 20), 64 << 20)

        out2 = pl.pallas_call(
            functools.partial(_ffn_kernel_split, eps=eps),
            out_shape=jax.ShapeDtypeStruct((m_pad, d_model), x.dtype),
            grid_spec=pltpu.PrefetchScalarGridSpec(
                num_scalar_prefetch=0,
                grid=(n_row, n_hid),
                in_specs=[
                    pl.BlockSpec((tm_eff, d_model), lambda i, j: (i, 0)),   # x
                    pl.BlockSpec((d_model, tf_eff), lambda i, j: (0, j)),   # w1
                    pl.BlockSpec((1, tf_eff), lambda i, j: (0, j)),         # b1
                    pl.BlockSpec((tf_eff, d_model), lambda i, j: (j, 0)),   # w2
                    pl.BlockSpec((1, d_model), lambda i, j: (0, 0)),        # b2
                    pl.BlockSpec((1, d_model), lambda i, j: (0, 0)),        # gamma
                    pl.BlockSpec((1, d_model), lambda i, j: (0, 0)),        # beta
                ],
                out_specs=pl.BlockSpec((tm_eff, d_model), lambda i, j: (i, 0)),
                scratch_shapes=[pltpu.VMEM((tm_eff, d_model), jnp.float32)],
            ),
            compiler_params=pltpu.CompilerParams(
                dimension_semantics=("parallel", "arbitrary"),
                vmem_limit_bytes=vmem_limit),
            cost_estimate=cost,
        )(x2, w1, b1_2, w2, b2_2, g_2, beta_2)

    return out2[:m].reshape(batch, seq, d_model)


def _init_params(key, d_model, feed_dim, dtype=jnp.float32):
    """Deterministic PyTorch-style uniform init for the two Linear layers."""
    k1, k2, k3, k4 = jax.random.split(key, 4)
    lim1 = 1.0 / (d_model ** 0.5)
    lim2 = 1.0 / (feed_dim ** 0.5)
    w1 = jax.random.uniform(k1, (d_model, feed_dim), dtype, -lim1, lim1)
    b1 = jax.random.uniform(k2, (feed_dim,), dtype, -lim1, lim1)
    w2 = jax.random.uniform(k3, (feed_dim, d_model), dtype, -lim2, lim2)
    b2 = jax.random.uniform(k4, (d_model,), dtype, -lim2, lim2)
    gamma = jnp.ones((d_model,), dtype)
    beta = jnp.zeros((d_model,), dtype)
    return w1, b1, w2, b2, gamma, beta


def _reference(x, w1, b1, w2, b2, gamma, beta, eps=1e-5):
    h = jnp.maximum(x @ w1 + b1, 0.0)
    y = h @ w2 + b2
    z = y + x
    mu = z.mean(-1, keepdims=True)
    var = ((z - mu) ** 2).mean(-1, keepdims=True)
    return (z - mu) / jnp.sqrt(var + eps) * gamma + beta


if __name__ == "__main__":
    # Small but lane-dense shapes: d_model multiple of 128 keeps output stores
    # unmasked; feed_dim=512 exercises both the fused single-pass path (tf=512)
    # and the hidden-dim accumulation path (tf=256).
    batch, seq, d_model, feed_dim = 2, 8, 128, 512

    key = jax.random.PRNGKey(0)
    kx, kp = jax.random.split(key)
    x = jax.random.normal(kx, (batch, seq, d_model), jnp.float32)
    w1, b1, w2, b2, gamma, beta = _init_params(kp, d_model, feed_dim)

    ref = _reference(x, w1, b1, w2, b2, gamma, beta)

    # Single-pass (fully fused) path.
    out_single = feed_forward(x, w1, b1, w2, b2, gamma, beta, tf=512)
    out_single = jax.block_until_ready(out_single)
    assert jnp.allclose(out_single, ref, atol=1e-3, rtol=1e-3), \
        "single-pass mismatch vs reference"

    # Hidden-dim tiled (accumulation) path.
    out_split = feed_forward(x, w1, b1, w2, b2, gamma, beta, tf=256)
    out_split = jax.block_until_ready(out_split)
    assert jnp.allclose(out_split, ref, atol=1e-3, rtol=1e-3), \
        "split-path mismatch vs reference"

    print("KERNEL_OK")
</pallas_src>

<mosaic_0001>
module attributes {stable_mosaic.version = 11 : i64} {
  func.func @_ffn_kernel_single(%arg0: i32, %arg1: memref<16x128xf32, #tpu.memory_space<vmem>>, %arg2: memref<128x512xf32, #tpu.memory_space<vmem>>, %arg3: memref<1x512xf32, #tpu.memory_space<vmem>>, %arg4: memref<512x128xf32, #tpu.memory_space<vmem>>, %arg5: memref<1x128xf32, #tpu.memory_space<vmem>>, %arg6: memref<1x128xf32, #tpu.memory_space<vmem>>, %arg7: memref<1x128xf32, #tpu.memory_space<vmem>>, %arg8: memref<16x128xf32, #tpu.memory_space<vmem>>) attributes {dimension_semantics = [#tpu.dimension_semantics<parallel>], iteration_bounds = array<i64: 1>, scalar_prefetch = 0 : i64, scratch_operands = 0 : i64, tpu.core_type = #tpu.core_type<tc>, window_params = [{transform_indices = @transform_0, window_bounds = array<i64: 16, 128>}, {pipeline_mode = #tpu.pipeline_mode<synchronous>, transform_indices = @transform_1, window_bounds = array<i64: 128, 512>}, {pipeline_mode = #tpu.pipeline_mode<synchronous>, transform_indices = @transform_2, window_bounds = array<i64: 1, 512>}, {pipeline_mode = #tpu.pipeline_mode<synchronous>, transform_indices = @transform_3, window_bounds = array<i64: 512, 128>}, {pipeline_mode = #tpu.pipeline_mode<synchronous>, transform_indices = @transform_4, window_bounds = array<i64: 1, 128>}, {pipeline_mode = #tpu.pipeline_mode<synchronous>, transform_indices = @transform_5, window_bounds = array<i64: 1, 128>}, {pipeline_mode = #tpu.pipeline_mode<synchronous>, transform_indices = @transform_6, window_bounds = array<i64: 1, 128>}, {transform_indices = @transform_7, window_bounds = array<i64: 16, 128>}]} {
    %c0 = arith.constant 0 : index
    %c0_0 = arith.constant 0 : index
    %0 = vector.load %arg1[%c0, %c0_0] : memref<16x128xf32, #tpu.memory_space<vmem>>, vector<16x128xf32>
    %c0_1 = arith.constant 0 : index
    %c0_2 = arith.constant 0 : index
    %1 = vector.load %arg2[%c0_1, %c0_2] : memref<128x512xf32, #tpu.memory_space<vmem>>, vector<128x512xf32>
    %cst = arith.constant dense<0.000000e+00> : vector<16x512xf32>
    %2 = tpu.matmul %0, %1, %cst {dimension_numbers = #tpu.dot_dimension_numbers<[1], [0], [0], [1], [0, 0, 1, 1], [], []>} : vector<16x128xf32>, vector<128x512xf32>, vector<16x512xf32> -> vector<16x512xf32>
    %c0_3 = arith.constant 0 : index
    %c0_4 = arith.constant 0 : index
    %3 = vector.load %arg3[%c0_3, %c0_4] : memref<1x512xf32, #tpu.memory_space<vmem>>, vector<1x512xf32>
    %4 = vector.broadcast %3 : vector<1x512xf32> to vector<16x512xf32>
    %5 = arith.addf %2, %4 : vector<16x512xf32>
    %cst_5 = arith.constant 0.000000e+00 : f32
    %6 = vector.broadcast %cst_5 : f32 to vector<16x512xf32>
    %7 = arith.maximumf %5, %6 : vector<16x512xf32>
    %c0_6 = arith.constant 0 : index
    %c0_7 = arith.constant 0 : index
    %8 = vector.load %arg4[%c0_6, %c0_7] : memref<512x128xf32, #tpu.memory_space<vmem>>, vector<512x128xf32>
    %cst_8 = arith.constant dense<0.000000e+00> : vector<16x128xf32>
    %9 = tpu.matmul %7, %8, %cst_8 {dimension_numbers = #tpu.dot_dimension_numbers<[1], [0], [0], [1], [0, 0, 1, 1], [], []>} : vector<16x512xf32>, vector<512x128xf32>, vector<16x128xf32> -> vector<16x128xf32>
    %c0_9 = arith.constant 0 : index
    %c0_10 = arith.constant 0 : index
    %10 = vector.load %arg5[%c0_9, %c0_10] : memref<1x128xf32, #tpu.memory_space<vmem>>, vector<1x128xf32>
    %11 = vector.broadcast %10 : vector<1x128xf32> to vector<16x128xf32>
    %12 = arith.addf %9, %11 : vector<16x128xf32>
    %13 = arith.addf %12, %0 : vector<16x128xf32>
    %c0_11 = arith.constant 0 : index
    %c0_12 = arith.constant 0 : index
    %14 = vector.load %arg6[%c0_11, %c0_12] : memref<1x128xf32, #tpu.memory_space<vmem>>, vector<1x128xf32>
    %c0_13 = arith.constant 0 : index
    %c0_14 = arith.constant 0 : index
    %15 = vector.load %arg7[%c0_13, %c0_14] : memref<1x128xf32, #tpu.memory_space<vmem>>, vector<1x128xf32>
    %cst_15 = arith.constant dense<0.000000e+00> : vector<16xf32>
    %16 = vector.multi_reduction <add>, %13, %cst_15 [1] : vector<16x128xf32> to vector<16xf32>
    %17 = vector.shape_cast %16 : vector<16xf32> to vector<16x1xf32>
    %cst_16 = arith.constant 1.280000e+02 : f32
    %18 = vector.broadcast %cst_16 : f32 to vector<16x1xf32>
    %19 = arith.divf %17, %18 : vector<16x1xf32>
    %20 = vector.broadcast %19 : vector<16x1xf32> to vector<16x128xf32>
    %21 = arith.subf %13, %20 : vector<16x128xf32>
    %22 = arith.mulf %21, %21 : vector<16x128xf32>
    %cst_17 = arith.constant dense<0.000000e+00> : vector<16xf32>
    %23 = vector.multi_reduction <add>, %22, %cst_17 [1] : vector<16x128xf32> to vector<16xf32>
    %24 = vector.shape_cast %23 : vector<16xf32> to vector<16x1xf32>
    %cst_18 = arith.constant 1.280000e+02 : f32
    %25 = vector.broadcast %cst_18 : f32 to vector<16x1xf32>
    %26 = arith.divf %24, %25 : vector<16x1xf32>
    %cst_19 = arith.constant 9.99999974E-6 : f32
    %27 = vector.broadcast %cst_19 : f32 to vector<16x1xf32>
    %28 = arith.addf %26, %27 : vector<16x1xf32>
    %29 = math.rsqrt %28 : vector<16x1xf32>
    %30 = vector.broadcast %29 : vector<16x1xf32> to vector<16x128xf32>
    %31 = arith.mulf %21, %30 : vector<16x128xf32>
    %32 = vector.broadcast %14 : vector<1x128xf32> to vector<16x128xf32>
    %33 = arith.mulf %31, %32 : vector<16x128xf32>
    %34 = vector.broadcast %15 : vector<1x128xf32> to vector<16x128xf32>
    %35 = arith.addf %33, %34 : vector<16x128xf32>
    %c0_20 = arith.constant 0 : index
    %c0_21 = arith.constant 0 : index
    %36 = vector.load %arg8[%c0_20, %c0_21] : memref<16x128xf32, #tpu.memory_space<vmem>>, vector<16x128xf32>
    tpu.vector_store %arg8[%c0_20, %c0_21], %35 {strides = array<i32>} : memref<16x128xf32, #tpu.memory_space<vmem>>, vector<16x128xf32>,
    return
  }
  func.func @transform_0(%arg0: i32) -> (i32, i32) {
    %c0_i32 = arith.constant 0 : i32
    %c0_i32_0 = arith.constant 0 : i32
    return %arg0, %c0_i32 : i32, i32
  }
  func.func @transform_1(%arg0: i32) -> (i32, i32) {
    %c0_i32 = arith.constant 0 : i32
    %c0_i32_0 = arith.constant 0 : i32
    %c0_i32_1 = arith.constant 0 : i32
    return %c0_i32, %c0_i32_0 : i32, i32
  }
  func.func @transform_2(%arg0: i32) -> (i32, i32) {
    %c0_i32 = arith.constant 0 : i32
    %c0_i32_0 = arith.constant 0 : i32
    %c0_i32_1 = arith.constant 0 : i32
    return %c0_i32, %c0_i32_0 : i32, i32
  }
  func.func @transform_3(%arg0: i32) -> (i32, i32) {
    %c0_i32 = arith.constant 0 : i32
    %c0_i32_0 = arith.constant 0 : i32
    %c0_i32_1 = arith.constant 0 : i32
    return %c0_i32, %c0_i32_0 : i32, i32
  }
  func.func @transform_4(%arg0: i32) -> (i32, i32) {
    %c0_i32 = arith.constant 0 : i32
    %c0_i32_0 = arith.constant 0 : i32
    %c0_i32_1 = arith.constant 0 : i32
    return %c0_i32, %c0_i32_0 : i32, i32
  }
  func.func @transform_5(%arg0: i32) -> (i32, i32) {
    %c0_i32 = arith.constant 0 : i32
    %c0_i32_0 = arith.constant 0 : i32
    %c0_i32_1 = arith.constant 0 : i32
    return %c0_i32, %c0_i32_0 : i32, i32
  }
  func.func @transform_6(%arg0: i32) -> (i32, i32) {
    %c0_i32 = arith.constant 0 : i32
    %c0_i32_0 = arith.constant 0 : i32
    %c0_i32_1 = arith.constant 0 : i32
    return %c0_i32, %c0_i32_0 : i32, i32
  }
  func.func @transform_7(%arg0: i32) -> (i32, i32) {
    %c0_i32 = arith.constant 0 : i32
    %c0_i32_0 = arith.constant 0 : i32
    return %arg0, %c0_i32 : i32, i32
  }
}

</mosaic_0001>

<bundles_post_ra>
// kernel: tpu_custom_call.1
= control target key start
LH: loop header
LB: loop body
LE: loop exit
PB: predicated region body
PF: predicated region fallthrough
CT: control target
= control target key end

     0   :  { %12 = vsyncpa [#allocation3], 0  ;;  %s752_s0 = inlined_call_operand.hbm [shape: f32[16,128], index: 0, kind: input, shape index: {}]   ;;  %s753_s1 = inlined_call_operand.hbm [shape: f32[128,512], index: 1, kind: input, shape index: {}]   ;;  %s754_s2 = inlined_call_operand.hbm [shape: f32[1,512], index: 2, kind: input, shape index: {}]   ;;  %s755_s3 = inlined_call_operand.hbm [shape: f32[512,128], index: 3, kind: input, shape index: {}]   ;;  %s756_s4 = inlined_call_operand.vmem [shape: f32[1,128], index: 4, kind: input, shape index: {}]   ;;  %s757_s5 = inlined_call_operand.vmem [shape: f32[1,128], index: 5, kind: input, shape index: {}]   ;;  %s758_s6 = inlined_call_operand.vmem [shape: f32[1,128], index: 6, kind: input, shape index: {}]   ;;  %s759_s7 = inlined_call_operand.hbm [shape: f32[16,128], index: 7, kind: output, shape index: {}]  }
   0x1   :  { %13 = vsyncpa [#allocation6], 0 }
   0x2   :  { %14 = vsyncpa [#allocation9], 0  ;;  %s33_s26 = sshll.u32 %s753_s1, 4  ;;  %s34_s26 = int_to_ptr.hbm [resolvable:$true] %s33_s26 }
   0x3   :  { %15 = vsyncpa [#allocation4], 0  ;;  %s655_s27 = smov [#allocation5]   ;;  %s20_s8 = sshll.u32 %s752_s0, 4  ;;  %s21_s8 = int_to_ptr.hbm [resolvable:$true] %s20_s8 }
   0x4   :  { %s35_s28 = sshll.u32 %s655_s27, 4  ;;  %s656_s9 = smov 512   ;;  %s36_s28 = int_to_ptr.vmem [resolvable:$true] %s35_s28 }
   0x5   :  { %s657_s10 = smov 32   ;;  %s658_s11 = smov [#allocation2]  }
   0x6   :  { %41 = dma.hbm_to_vmem [thread:$0]  %s34_s26, 8192, %s36_s28, [#allocation6], %s656_s9, %s656_s9, %s657_s10  }
   0x7   :  { %s22_s12 = sshll.u32 %s658_s11, 4  ;;  %s659_s13 = smov 128   ;;  %s23_s12 = int_to_ptr.vmem [resolvable:$true] %s22_s12 }
   0x8   :  { %s660_s14 = smov 8   ;;  %s47_s16 = sshll.u32 %s754_s2, 4  ;;  %s48_s16 = int_to_ptr.hbm [resolvable:$true] %s47_s16 }
   0x9   :  { %28 = dma.hbm_to_vmem [thread:$0]  %s21_s8, 256, %s23_s12, [#allocation3], %s659_s13, %s659_s13, %s660_s14  }
   0xa   :  { %s661_s17 = smov [#allocation7]   ;;  %s57_s20 = sshll.u32 %s755_s3, 4  ;;  %s58_s20 = int_to_ptr.hbm [resolvable:$true] %s57_s20 }
   0xb   :  { %s49_s0 = sshll.u32 %s661_s17, 4  ;;  %s662_s21 = smov [#allocation8]   ;;  %s50_s0 = int_to_ptr.vmem [resolvable:$true] %s49_s0 }
   0xc   :  { %52 = dma.hbm_to_vmem [thread:$0]  %s48_s16, 64, %s50_s0, [#allocation6]  }
   0xd   :  { %s59_s22 = sshll.u32 %s662_s21, 4  ;;  %s60_s22 = int_to_ptr.vmem [resolvable:$true] %s59_s22 }
   0xe   :  { %65 = dma.hbm_to_vmem [thread:$0]  %s58_s20, 8192, %s60_s22, [#allocation9], %s659_s13, %s659_s13, %s660_s14  }
   0xf   :  { %647 = dma.done.wait [#allocation3], 256  }
  0x10   :  { %648 = vsyncadd [#allocation3], 4294967040 }
  0x11   :  { %649 = dma.done.wait [#allocation6], 8256  }
  0x12   :  { %650 = vsyncadd [#allocation6], 4294959040 }
  0x13   :  { %651 = dma.done.wait [#allocation9], 8192  }
  0x14   :  { %652 = vsyncadd [#allocation9], 4294959104  ;;  %v152_v0 = vld [vmem:[#allocation5 + $0x1f0] sm:$0xff]  ;;  %v153_v2 = vld [vmem:[#allocation5 + $0x1f8] sm:$0xff]  ;;  %s664_s26 = smov [#allocation10]   ;;  %s493_s29 = sshll.u32 %s759_s7, 4  ;;  %s494_s29 = int_to_ptr.hbm [resolvable:$true] %s493_s29 }
  0x15   :  { %v148_v1 = vld [vmem:[#allocation5 + $0x1d0] sm:$0xff]  ;;  %210 = vmatpush.msra.mxu2 %v152_v0  ;;  %233 = vmatpush.msra.mxu3 %v153_v2  ;;  %v149_v3 = vld [vmem:[#allocation5 + $0x1d8] sm:$0xff]  ;;  %v150_v6 = vld [vmem:[#allocation5 + $0x1e0] sm:$0xff] }
  0x16   :  { %v144_v4 = vld [vmem:[#allocation5 + $0x1b0] sm:$0xff]  ;;  %v145_v5 = vld [vmem:[#allocation5 + $0x1b8] sm:$0xff]  ;;  %v146_v7 = vld [vmem:[#allocation5 + $0x1c0] sm:$0xff]  ;;  %164 = vmatpush.msra.mxu0 %v150_v6 }
  0x17   :  { %211 = vmatpush.msra.mxu2 %v148_v1  ;;  %234 = vmatpush.msra.mxu3 %v149_v3  ;;  %v151_v8 = vld [vmem:[#allocation5 + $0x1e8] sm:$0xff]  ;;  %v140_v9 = vld [vmem:[#allocation5 + $0x190] sm:$0xff]  ;;  %v141_v10 = vld [vmem:[#allocation5 + $0x198] sm:$0xff] }
  0x18   :  { %187 = vmatpush.msra.mxu1 %v151_v8  ;;  %v142_v11 = vld [vmem:[#allocation5 + $0x1a0] sm:$0xff]  ;;  %v147_v12 = vld [vmem:[#allocation5 + $0x1c8] sm:$0xff]  ;;  %v136_v13 = vld [vmem:[#allocation5 + $0x170] sm:$0xff]  ;;  %165 = vmatpush.msra.mxu0 %v146_v7 }
  0x19   :  { %212 = vmatpush.msra.mxu2 %v144_v4  ;;  %235 = vmatpush.msra.mxu3 %v145_v5  ;;  %v137_v14 = vld [vmem:[#allocation5 + $0x178] sm:$0xff]  ;;  %v143_v15 = vld [vmem:[#allocation5 + $0x1a8] sm:$0xff]  ;;  %v138_v16 = vld [vmem:[#allocation5 + $0x180] sm:$0xff] }
  0x1a   :  { %188 = vmatpush.msra.mxu1 %v147_v12  ;;  %v139_v17 = vld [vmem:[#allocation5 + $0x188] sm:$0xff]  ;;  %v132_v18 = vld [vmem:[#allocation5 + $0x150] sm:$0xff]  ;;  %166 = vmatpush.msra.mxu0 %v142_v11  ;;  %v133_v19 = vld [vmem:[#allocation5 + $0x158] sm:$0xff] }
  0x1b   :  { %213 = vmatpush.msra.mxu2 %v140_v9  ;;  %236 = vmatpush.msra.mxu3 %v141_v10  ;;  %v134_v20 = vld [vmem:[#allocation5 + $0x160] sm:$0xff]  ;;  %v135_v21 = vld [vmem:[#allocation5 + $0x168] sm:$0xff]  ;;  %v128_v22 = vld [vmem:[#allocation5 + $0x130] sm:$0xff] }
  0x1c   :  { %189 = vmatpush.msra.mxu1 %v143_v15  ;;  %167 = vmatpush.msra.mxu0 %v138_v16  ;;  %v129_v23 = vld [vmem:[#allocation5 + $0x138] sm:$0xff]  ;;  %v130_v24 = vld [vmem:[#allocation5 + $0x140] sm:$0xff]  ;;  %v131_v25 = vld [vmem:[#allocation5 + $0x148] sm:$0xff] }
  0x1d   :  { %214 = vmatpush.msra.mxu2 %v136_v13  ;;  %237 = vmatpush.msra.mxu3 %v137_v14  ;;  %v124_v26 = vld [vmem:[#allocation5 + $0x110] sm:$0xff]  ;;  %v125_v27 = vld [vmem:[#allocation5 + $0x118] sm:$0xff]  ;;  %v126_v28 = vld [vmem:[#allocation5 + $0x120] sm:$0xff] }
  0x1e   :  { %190 = vmatpush.msra.mxu1 %v139_v17  ;;  %168 = vmatpush.msra.mxu0 %v134_v20  ;;  %v127_v29 = vld [vmem:[#allocation5 + $0x128] sm:$0xff]  ;;  %v120_v30 = vld [vmem:[#allocation5 + $0xf0] sm:$0xff]  ;;  %v121_v31 = vld [vmem:[#allocation5 + $0xf8] sm:$0xff] }
  0x1f   :  { %215 = vmatpush.msra.mxu2 %v132_v18  ;;  %238 = vmatpush.msra.mxu3 %v133_v19  ;;  %v122_v32 = vld [vmem:[#allocation5 + $0x100] sm:$0xff]  ;;  %v123_v33 = vld [vmem:[#allocation5 + $0x108] sm:$0xff]  ;;  %v116_v34 = vld [vmem:[#allocation5 + $0xd0] sm:$0xff] }
  0x20   :  { %191 = vmatpush.msra.mxu1 %v135_v21  ;;  %169 = vmatpush.msra.mxu0 %v130_v24  ;;  %v117_v35 = vld [vmem:[#allocation5 + $0xd8] sm:$0xff]  ;;  %v118_v36 = vld [vmem:[#allocation5 + $0xe0] sm:$0xff]  ;;  %v119_v37 = vld [vmem:[#allocation5 + $0xe8] sm:$0xff] }
  0x21   :  { %216 = vmatpush.msra.mxu2 %v128_v22  ;;  %239 = vmatpush.msra.mxu3 %v129_v23  ;;  %v112_v38 = vld [vmem:[#allocation5 + $0xb0] sm:$0xff]  ;;  %v113_v39 = vld [vmem:[#allocation5 + $0xb8] sm:$0xff]  ;;  %v114_v40 = vld [vmem:[#allocation5 + $0xc0] sm:$0xff] }
  0x22   :  { %192 = vmatpush.msra.mxu1 %v131_v25  ;;  %170 = vmatpush.msra.mxu0 %v126_v28  ;;  %v115_v41 = vld [vmem:[#allocation5 + $0xc8] sm:$0xff]  ;;  %v108_v42 = vld [vmem:[#allocation5 + $0x90] sm:$0xff]  ;;  %v109_v43 = vld [vmem:[#allocation5 + $0x98] sm:$0xff] }
  0x23   :  { %217 = vmatpush.msra.mxu2 %v124_v26  ;;  %240 = vmatpush.msra.mxu3 %v125_v27  ;;  %v110_v44 = vld [vmem:[#allocation5 + $0xa0] sm:$0xff]  ;;  %v111_v45 = vld [vmem:[#allocation5 + $0xa8] sm:$0xff]  ;;  %v104_v46 = vld [vmem:[#allocation5 + $0x70] sm:$0xff] }
  0x24   :  { %193 = vmatpush.msra.mxu1 %v127_v29  ;;  %171 = vmatpush.msra.mxu0 %v122_v32  ;;  %v105_v47 = vld [vmem:[#allocation5 + $0x78] sm:$0xff]  ;;  %v106_v48 = vld [vmem:[#allocation5 + $0x80] sm:$0xff]  ;;  %v107_v49 = vld [vmem:[#allocation5 + $0x88] sm:$0xff] }
  0x25   :  { %218 = vmatpush.msra.mxu2 %v120_v30  ;;  %241 = vmatpush.msra.mxu3 %v121_v31  ;;  %v100_v50 = vld [vmem:[#allocation5 + $0x50] sm:$0xff]  ;;  %v101_v51 = vld [vmem:[#allocation5 + $0x58] sm:$0xff]  ;;  %v102_v52 = vld [vmem:[#allocation5 + $0x60] sm:$0xff] }
  0x26   :  { %194 = vmatpush.msra.mxu1 %v123_v33  ;;  %172 = vmatpush.msra.mxu0 %v118_v36  ;;  %v103_v53 = vld [vmem:[#allocation5 + $0x68] sm:$0xff]  ;;  %v96_v54 = vld [vmem:[#allocation5 + $0x30] sm:$0xff]  ;;  %v97_v55 = vld [vmem:[#allocation5 + $0x38] sm:$0xff] }
  0x27   :  { %219 = vmatpush.msra.mxu2 %v116_v34  ;;  %242 = vmatpush.msra.mxu3 %v117_v35  ;;  %v98_v56 = vld [vmem:[#allocation5 + $0x40] sm:$0xff]  ;;  %v99_v57 = vld [vmem:[#allocation5 + $0x48] sm:$0xff]  ;;  %v92_v58 = vld [vmem:[#allocation5 + $0x10] sm:$0xff] }
  0x28   :  { %195 = vmatpush.msra.mxu1 %v119_v37  ;;  %173 = vmatpush.msra.mxu0 %v114_v40  ;;  %v93_v59 = vld [vmem:[#allocation5 + $0x18] sm:$0xff]  ;;  %v723_v60 = vld [vmem:[#allocation2] sm:$0xff]  ;;  %v94_v61 = vld [vmem:[#allocation5 + $0x20] sm:$0xff] }
  0x29   :  { %220 = vmatpush.msra.mxu2 %v112_v38  ;;  %243 = vmatpush.msra.mxu3 %v113_v39  ;;  %v95_v62 = vld [vmem:[#allocation5 + $0x28] sm:$0xff]  ;;  %v311_v63 = vld [vmem:[#allocation8 + $0x178] sm:$0xff]  ;;  %v310_v4 = vld [vmem:[#allocation8 + $0x170] sm:$0xff] }
  0x2a   :  { %196 = vmatpush.msra.mxu1 %v115_v41  ;;  %174 = vmatpush.msra.mxu0 %v110_v44  ;;  %v327_v0 = vld [vmem:[#allocation8 + $0x1f8] sm:$0xff]  ;;  %v91_v2 = vld [vmem:[#allocation5 + $0x8] sm:$0xff]  ;;  %v326_v6 = vld [vmem:[#allocation8 + $0x1f0] sm:$0xff] }
  0x2b   :  { %221 = vmatpush.msra.mxu2 %v108_v42  ;;  %244 = vmatpush.msra.mxu3 %v109_v43  ;;  %v90_v1 = vld [vmem:[#allocation5] sm:$0xff]  ;;  %v278_v7 = vld [vmem:[#allocation8 + $0x70] sm:$0xff]  ;;  %v309_v8 = vld [vmem:[#allocation8 + $0x168] sm:$0xff] }
  0x2c   :  { %197 = vmatpush.msra.mxu1 %v111_v45  ;;  %175 = vmatpush.msra.mxu0 %v106_v48  ;;  %v279_v3 = vld [vmem:[#allocation8 + $0x78] sm:$0xff]  ;;  %v277_v10 = vld [vmem:[#allocation8 + $0x68] sm:$0xff]  ;;  %v294_v11 = vld [vmem:[#allocation8 + $0xf0] sm:$0xff] }
  0x2d   :  { %222 = vmatpush.msra.mxu2 %v104_v46  ;;  %245 = vmatpush.msra.mxu3 %v105_v47  ;;  %v295_v5 = vld [vmem:[#allocation8 + $0xf8] sm:$0xff]  ;;  %v308_v12 = vld [vmem:[#allocation8 + $0x160] sm:$0xff]  ;;  %v325_v13 = vld [vmem:[#allocation8 + $0x1e8] sm:$0xff] }
  0x2e   :  { %198 = vmatpush.msra.mxu1 %v107_v49  ;;  %176 = vmatpush.msra.mxu0 %v102_v52  ;;  %v729_v9 = vld [vmem:[#allocation2 + $0x8] sm:$0xff]  ;;  %v276_v14 = vld [vmem:[#allocation8 + $0x60] sm:$0xff]  ;;  %v293_v15 = vld [vmem:[#allocation8 + $0xe8] sm:$0xff] }
  0x2f   :  { %223 = vmatpush.msra.mxu2 %v100_v50  ;;  %246 = vmatpush.msra.mxu3 %v101_v51  ;;  %v307_v16 = vld [vmem:[#allocation8 + $0x158] sm:$0xff]  ;;  %v324_v17 = vld [vmem:[#allocation8 + $0x1e0] sm:$0xff]  ;;  %v306_v20 = vld [vmem:[#allocation8 + $0x150] sm:$0xff] }
  0x30   :  { %199 = vmatpush.msra.mxu1 %v103_v53  ;;  %177 = vmatpush.msra.mxu0 %v98_v56  ;;  %v275_v18 = vld [vmem:[#allocation8 + $0x58] sm:$0xff]  ;;  %v292_v19 = vld [vmem:[#allocation8 + $0xe0] sm:$0xff]  ;;  %v274_v22 = vld [vmem:[#allocation8 + $0x50] sm:$0xff] }
  0x31   :  { %224 = vmatpush.msra.mxu2 %v96_v54  ;;  %247 = vmatpush.msra.mxu3 %v97_v55  ;;  %v323_v21 = vld [vmem:[#allocation8 + $0x1d8] sm:$0xff]  ;;  %v305_v24 = vld [vmem:[#allocation8 + $0x148] sm:$0xff]  ;;  %v322_v25 = vld [vmem:[#allocation8 + $0x1d0] sm:$0xff] }
  0x32   :  { %200 = vmatpush.msra.mxu1 %v99_v57  ;;  %178 = vmatpush.msra.mxu0 %v94_v61  ;;  %v291_v23 = vld [vmem:[#allocation8 + $0xd8] sm:$0xff]  ;;  %v273_v26 = vld [vmem:[#allocation8 + $0x48] sm:$0xff]  ;;  %v290_v27 = vld [vmem:[#allocation8 + $0xd0] sm:$0xff] }
  0x33   :  { %225 = vmatpush.msra.mxu2 %v92_v58  ;;  %248 = vmatpush.msra.mxu3 %v93_v59  ;;  %v304_v28 = vld [vmem:[#allocation8 + $0x140] sm:$0xff]  ;;  %v321_v29 = vld [vmem:[#allocation8 + $0x1c8] sm:$0xff]  ;;  %v303_v32 = vld [vmem:[#allocation8 + $0x138] sm:$0xff] }
  0x34   :  { %226 = vmatmul.f32.vlgmr.msra.gmra.mxu2 %v723_v60  ;;  %249 = vmatmul.f32.vlgmr.msra.gmra.mxu3 %v723_v60  ;;  %v272_v30 = vld [vmem:[#allocation8 + $0x40] sm:$0xff]  ;;  %v289_v31 = vld [vmem:[#allocation8 + $0xc8] sm:$0xff]  ;;  %v271_v34 = vld [vmem:[#allocation8 + $0x38] sm:$0xff] }
  0x35   :  { %201 = vmatpush.msra.mxu1 %v95_v62  ;;  %378 = vmatpush.msrb.mxu2 %v311_v63  ;;  %v320_v33 = vld [vmem:[#allocation8 + $0x1c0] sm:$0xff]  ;;  %v302_v36 = vld [vmem:[#allocation8 + $0x130] sm:$0xff]  ;;  %v319_v37 = vld [vmem:[#allocation8 + $0x1b8] sm:$0xff] }
  0x36   :  { %401 = vmatpush.msrb.mxu3 %v327_v0  ;;  %179 = vmatpush.msra.mxu0 %v90_v1  ;;  %v288_v35 = vld [vmem:[#allocation8 + $0xc0] sm:$0xff]  ;;  %v270_v38 = vld [vmem:[#allocation8 + $0x30] sm:$0xff]  ;;  %v287_v39 = vld [vmem:[#allocation8 + $0xb8] sm:$0xff] }
  0x37   :  { %202 = vmatpush.msra.mxu1 %v91_v2  ;;  %180 = vmatmul.f32.vlgmr.msra.gmra.mxu0 %v723_v60  ;;  %v301_v40 = vld [vmem:[#allocation8 + $0x128] sm:$0xff]  ;;  %v318_v41 = vld [vmem:[#allocation8 + $0x1b0] sm:$0xff]  ;;  %v300_v44 = vld [vmem:[#allocation8 + $0x120] sm:$0xff] }
  0x38   :  { %203 = vmatmul.f32.vlgmr.msra.gmra.mxu1 %v723_v60  ;;  %332 = vmatpush.msrb.mxu0 %v279_v3  ;;  %v269_v42 = vld [vmem:[#allocation8 + $0x28] sm:$0xff]  ;;  %v286_v43 = vld [vmem:[#allocation8 + $0xb0] sm:$0xff]  ;;  %v268_v46 = vld [vmem:[#allocation8 + $0x20] sm:$0xff] }
  0x39   :  { %379 = vmatpush.msrb.mxu2 %v310_v4  ;;  %355 = vmatpush.msrb.mxu1 %v295_v5  ;;  %v317_v45 = vld [vmem:[#allocation8 + $0x1a8] sm:$0xff]  ;;  %v299_v48 = vld [vmem:[#allocation8 + $0x118] sm:$0xff]  ;;  %v316_v49 = vld [vmem:[#allocation8 + $0x1a0] sm:$0xff] }
  0x3a   :  { %402 = vmatpush.msrb.mxu3 %v326_v6  ;;  %333 = vmatpush.msrb.mxu0 %v278_v7  ;;  %v285_v47 = vld [vmem:[#allocation8 + $0xa8] sm:$0xff]  ;;  %v267_v50 = vld [vmem:[#allocation8 + $0x18] sm:$0xff]  ;;  %v284_v51 = vld [vmem:[#allocation8 + $0xa0] sm:$0xff] }
  0x3b   :  { %380 = vmatpush.msrb.mxu2 %v309_v8  ;;  %356 = vmatpush.msrb.mxu1 %v294_v11  ;;  %v298_v52 = vld [vmem:[#allocation8 + $0x110] sm:$0xff]  ;;  %v315_v53 = vld [vmem:[#allocation8 + $0x198] sm:$0xff]  ;;  %v297_v56 = vld [vmem:[#allocation8 + $0x108] sm:$0xff] }
  0x3c   :  { %229 = vmatmul.f32.gmra.mxu2 %v729_v9  ;;  %252 = vmatmul.f32.gmra.mxu3 %v729_v9  ;;  %v266_v54 = vld [vmem:[#allocation8 + $0x10] sm:$0xff]  ;;  %v283_v55 = vld [vmem:[#allocation8 + $0x98] sm:$0xff]  ;;  %v265_v58 = vld [vmem:[#allocation8 + $0x8] sm:$0xff] }
  0x3d   :  { %334 = vmatpush.msrb.mxu0 %v277_v10  ;;  %381 = vmatpush.msrb.mxu2 %v308_v12  ;;  %v314_v57 = vld [vmem:[#allocation8 + $0x190] sm:$0xff]  ;;  %v296_v61 = vld [vmem:[#allocation8 + $0x100] sm:$0xff]  ;;  %v313_v62 = vld [vmem:[#allocation8 + $0x188] sm:$0xff] }
  0x3e   :  { %403 = vmatpush.msrb.mxu3 %v325_v13  ;;  %357 = vmatpush.msrb.mxu1 %v293_v15  ;;  %v282_v59 = vld [vmem:[#allocation8 + $0x90] sm:$0xff]  ;;  %v264_v63 = vld [vmem:[#allocation8] sm:$0xff]  ;;  %v281_v0 = vld [vmem:[#allocation8 + $0x88] sm:$0xff] }
  0x3f   :  { %335 = vmatpush.msrb.mxu0 %v276_v14  ;;  %382 = vmatpush.msrb.mxu2 %v307_v16  ;;  %v312_v1 = vld [vmem:[#allocation8 + $0x180] sm:$0xff]  ;;  %v154_v3 = vld [vmem:[#allocation7] sm:$0xf] }
  0x40   :  { %183 = vmatmul.f32.gmra.mxu0 %v729_v9  ;;  %206 = vmatmul.f32.gmra.mxu1 %v729_v9  ;;  %v280_v2 = vld [vmem:[#allocation8 + $0x80] sm:$0xff]  ;;  %v156_v4 = vperm.slane %v154_v3, 0  ;;  %v157_v5 = vperm.slane %v154_v3, 1  ;;  %v158_v6 = vperm.slane %v154_v3, 2  ;;  %v159_v7 = vperm.slane %v154_v3, 3 }
  0x41   :  { %404 = vmatpush.msrb.mxu3 %v324_v17  ;;  %336 = vmatpush.msrb.mxu0 %v275_v18 }
  0x42   :  { %358 = vmatpush.msrb.mxu1 %v292_v19  ;;  %383 = vmatpush.msrb.mxu2 %v306_v20 }
  0x43   :  { %405 = vmatpush.msrb.mxu3 %v323_v21  ;;  %337 = vmatpush.msrb.mxu0 %v274_v22 }
  0x44   :  { %359 = vmatpush.msrb.mxu1 %v291_v23  ;;  %384 = vmatpush.msrb.mxu2 %v305_v24 }
  0x45   :  { %406 = vmatpush.msrb.mxu3 %v322_v25  ;;  %338 = vmatpush.msrb.mxu0 %v273_v26 }
  0x46   :  { %360 = vmatpush.msrb.mxu1 %v290_v27  ;;  %385 = vmatpush.msrb.mxu2 %v304_v28 }
  0x47   :  { %407 = vmatpush.msrb.mxu3 %v321_v29  ;;  %339 = vmatpush.msrb.mxu0 %v272_v30 }
  0x48   :  { %361 = vmatpush.msrb.mxu1 %v289_v31  ;;  %386 = vmatpush.msrb.mxu2 %v303_v32 }
  0x49   :  { %408 = vmatpush.msrb.mxu3 %v320_v33  ;;  %340 = vmatpush.msrb.mxu0 %v271_v34  ;;  %v518_v33 = vld [vmem:[%s756_s4] ss:$0 sm:$0xff] }
  0x4a   :  { %362 = vmatpush.msrb.mxu1 %v288_v35  ;;  %387 = vmatpush.msrb.mxu2 %v302_v36 }
  0x4b   :  { %409 = vmatpush.msrb.mxu3 %v319_v37  ;;  %341 = vmatpush.msrb.mxu0 %v270_v38 }
  0x4c   :  { %363 = vmatpush.msrb.mxu1 %v287_v39  ;;  %388 = vmatpush.msrb.mxu2 %v301_v40 }
  0x4d   :  { %410 = vmatpush.msrb.mxu3 %v318_v41  ;;  %342 = vmatpush.msrb.mxu0 %v269_v42 }
  0x4e   :  { %364 = vmatpush.msrb.mxu1 %v286_v43  ;;  %389 = vmatpush.msrb.mxu2 %v300_v44 }
  0x4f   :  { %411 = vmatpush.msrb.mxu3 %v317_v45  ;;  %343 = vmatpush.msrb.mxu0 %v268_v46 }
  0x50   :  { %365 = vmatpush.msrb.mxu1 %v285_v47  ;;  %390 = vmatpush.msrb.mxu2 %v299_v48 }
  0x51   :  { %412 = vmatpush.msrb.mxu3 %v316_v49  ;;  %344 = vmatpush.msrb.mxu0 %v267_v50 }
  0x52   :  { %366 = vmatpush.msrb.mxu1 %v284_v51  ;;  %391 = vmatpush.msrb.mxu2 %v298_v52  ;;  %v663_v52 = vmov 128.0  }
  0x53   :  { %413 = vmatpush.msrb.mxu3 %v315_v53  ;;  %345 = vmatpush.msrb.mxu0 %v266_v54  ;;  %521 = vrcp.f32 %v663_v52 }
  0x54   :  { %367 = vmatpush.msrb.mxu1 %v283_v55  ;;  %392 = vmatpush.msrb.mxu2 %v297_v56 }
  0x55   :  { %414 = vmatpush.msrb.mxu3 %v314_v57  ;;  %346 = vmatpush.msrb.mxu0 %v265_v58 }
  0x56   :  { %368 = vmatpush.msrb.mxu1 %v282_v59  ;;  %393 = vmatpush.msrb.mxu2 %v296_v61 }
  0x57   :  { %415 = vmatpush.msrb.mxu3 %v313_v62  ;;  %347 = vmatpush.msrb.mxu0 %v264_v63 }
  0x58   :  { %369 = vmatpush.msrb.mxu1 %v281_v0 }
  0x59   :  { %416 = vmatpush.msrb.mxu3 %v312_v1  ;;  %v522_v53 = vpop.eup %521 }
  0x5a   :  { %370 = vmatpush.msrb.mxu1 %v280_v2  ;;  %v433_v54 = vmul.f32 128.0, %v522_v53  ;;  %vm437_vm0 = vweird.f32 %v522_v53 }
  0x5c   :  { %v434_v55 = vsub.f32 1.0, %v433_v54 }
  0x5e   :  { %v435_v56 = vmul.f32 %v522_v53, %v434_v55 }
  0x60   :  { %v436_v57 = vadd.f32 %v522_v53, %v435_v56 }
  0x62   :  { %v438_v58 = vsel %vm437_vm0, %v522_v53, %v436_v57 }
  0xb4   :  { %v181_v8 = vpop.f32.mrf.mxu0 }
  0xb5   :  { %v204_v10 = vpop.f32.mrf.mxu1  ;;  %v182_v11 = vadd.f32 %v181_v8, %v156_v4 }
  0xb6   :  { %v205_v12 = vadd.f32 %v204_v10, %v157_v5 }
  0xb7   :  { %v227_v13 = vpop.f32.mrf.mxu2  ;;  %v250_v14 = vpop.f32.mrf.mxu3  ;;  %v256_v16 = vmax.f32 %v182_v11, 0.0 }
  0xb8   :  { %v228_v15 = vadd.f32 %v227_v13, %v158_v6  ;;  %v251_v17 = vadd.f32 %v250_v14, %v159_v7  ;;  %v257_v18 = vmax.f32 %v205_v12, 0.0 }
  0xb9   :  { %348 = vmatmul.f32.vlgmr.msrb.gmra.mxu0 %v256_v16 }
  0xba   :  { %v258_v19 = vmax.f32 %v228_v15, 0.0  ;;  %v259_v20 = vmax.f32 %v251_v17, 0.0  ;;  %371 = vmatmul.f32.vlgmr.msrb.gmra.mxu1 %v257_v18  ;;  %v519_v17 = vld [vmem:[%s757_s5] ss:$0 sm:$0xff]  ;;  %s491_s5 = sshll.u32 %s664_s26, 4  ;;  %s492_s5 = int_to_ptr.vmem [resolvable:$true] %s491_s5 }
  0xbc   :  { %394 = vmatmul.f32.vlgmr.msrb.gmra.mxu2 %v258_v19  ;;  %417 = vmatmul.f32.vlgmr.msrb.gmra.mxu3 %v259_v20 }
  0xbd   :  { %v184_v21 = vpop.f32.mrf.mxu0  ;;  %v207_v22 = vpop.f32.mrf.mxu1 }
  0xbe   :  { %v185_v23 = vadd.f32 %v184_v21, %v156_v4  ;;  %v208_v24 = vadd.f32 %v207_v22, %v157_v5  ;;  %v520_v21 = vld [vmem:[%s758_s6] ss:$0 sm:$0xff] }
  0xbf   :  { %v230_v25 = vpop.f32.mrf.mxu2  ;;  %v253_v26 = vpop.f32.mrf.mxu3 }
  0xc0   :  { %v231_v27 = vadd.f32 %v230_v25, %v158_v6  ;;  %v260_v28 = vmax.f32 %v185_v23, 0.0  ;;  %v254_v29 = vadd.f32 %v253_v26, %v159_v7  ;;  %v261_v30 = vmax.f32 %v208_v24, 0.0 }
  0xc2   :  { %v262_v31 = vmax.f32 %v231_v27, 0.0  ;;  %v263_v32 = vmax.f32 %v254_v29, 0.0  ;;  %351 = vmatmul.f32.gmra.mxu0 %v260_v28  ;;  %374 = vmatmul.f32.gmra.mxu1 %v261_v30 }
  0xc4   :  { %397 = vmatmul.f32.gmra.mxu2 %v262_v31  ;;  %420 = vmatmul.f32.gmra.mxu3 %v263_v32 }
 0x136   :  { %v349_v34 = vpop.f32.mrf.mxu0 }
 0x137   :  { %v372_v35 = vpop.f32.mrf.mxu1  ;;  %v350_v36 = vadd.f32 %v518_v33, %v349_v34 }
 0x139   :  { %v373_v37 = vadd.f32 %v372_v35, %v350_v36 }
 0x13f   :  { %v395_v38 = vpop.f32.mrf.mxu2  ;;  %v418_v39 = vpop.f32.mrf.mxu3 }
 0x140   :  { %v396_v40 = vadd.f32 %v395_v38, %v373_v37  ;;  %v352_v41 = vpop.f32.mrf.mxu0  ;;  %v375_v43 = vpop.f32.mrf.mxu1 }
 0x141   :  { %v353_v42 = vadd.f32 %v518_v33, %v352_v41 }
 0x142   :  { %v419_v44 = vadd.f32 %v418_v39, %v396_v40 }
 0x143   :  { %v376_v45 = vadd.f32 %v375_v43, %v353_v42 }
 0x144   :  { %v424_v46 = vadd.f32 %v419_v44, %v723_v60 }
 0x146   :  { %428 = vadd.xlane.f32.xlu0 %v424_v46 }
 0x147   :  { %v398_v47 = vpop.f32.mrf.mxu2  ;;  %v421_v48 = vpop.f32.mrf.mxu3 }
 0x148   :  { %v399_v49 = vadd.f32 %v398_v47, %v376_v45 }
 0x14a   :  { %v422_v50 = vadd.f32 %v421_v48, %v399_v49 }
 0x14c   :  { %v425_v51 = vadd.f32 %v422_v50, %v729_v9 }
 0x14e   :  { %430 = vadd.xlane.f32.xlu0 %v425_v51 }
 0x1b9   :  { %v429_v59 = vpop.xlane.xlu0 %428 }
 0x1ba   :  { %v439_v61 = vmul.f32 %v438_v58, %v429_v59 }
 0x1bc   :  { %v441_v60 = vsub.f32 %v424_v46, %v439_v61 }
 0x1be   :  { %v443_v62 = vmul.f32 %v441_v60, %v441_v60 }
 0x1c0   :  { %445 = vadd.xlane.f32.xlu1 %v443_v62 }
 0x1c1   :  { %v431_v63 = vpop.xlane.xlu0 %430 }
 0x1c2   :  { %v440_v0 = vmul.f32 %v438_v58, %v431_v63 }
 0x1c4   :  { %v442_v1 = vsub.f32 %v425_v51, %v440_v0 }
 0x1c6   :  { %v444_v2 = vmul.f32 %v442_v1, %v442_v1 }
 0x1c8   :  { %447 = vadd.xlane.f32.xlu1 %v444_v2 }
 0x233   :  { %v446_v9 = vpop.xlane.xlu1 %445 }
 0x234   :  { %v449_v3 = vmul.f32 %v446_v9, %v438_v58 }
 0x236   :  { %v451_v4 = vadd.f32 1e-05, %v449_v3 }
 0x238   :  { %523 = vrsqrt.f32 %v451_v4  ;;  %vm459_vm2 = vweird.f32 %v451_v4 }
 0x23b   :  { %v448_v5 = vpop.xlane.xlu1 %447 }
 0x23c   :  { %v450_v6 = vmul.f32 %v448_v5, %v438_v58 }
 0x23e   :  { %v524_v7 = vpop.eup %523  ;;  %v452_v8 = vadd.f32 1e-05, %v450_v6 }
 0x23f   :  { %v454_v10 = vmul.f32 %v524_v7, %v451_v4  ;;  %vm460_vm1 = vweird.f32 %v524_v7 }
 0x240   :  { %525 = vrsqrt.f32 %v452_v8  ;;  %vm461_vm3 = vmor %vm459_vm2, %vm460_vm1  ;;  %vm469_vm5 = vweird.f32 %v452_v8 }
 0x241   :  { %v455_v11 = vmul.f32 %v524_v7, %v454_v10 }
 0x243   :  { %v456_v12 = vmul.f32 0.5, %v455_v11 }
 0x245   :  { %v457_v13 = vsub.f32 1.5, %v456_v12 }
 0x246   :  { %v526_v14 = vpop.eup %525 }
 0x247   :  { %v458_v15 = vmul.f32 %v524_v7, %v457_v13  ;;  %v464_v16 = vmul.f32 %v526_v14, %v452_v8  ;;  %vm470_vm4 = vweird.f32 %v526_v14 }
 0x248   :  { %vm471_vm6 = vmor %vm469_vm5, %vm470_vm4 }
 0x249   :  { %v462_v18 = vsel %vm461_vm3, %v524_v7, %v458_v15  ;;  %v465_v19 = vmul.f32 %v526_v14, %v464_v16 }
 0x24a   :  { %v473_v20 = vmul.f32 %v462_v18, %v441_v60 }
 0x24b   :  { %v466_v22 = vmul.f32 0.5, %v465_v19 }
 0x24c   :  { %v478_v23 = vmul.f32 %v519_v17, %v473_v20 }
 0x24d   :  { %v467_v24 = vsub.f32 1.5, %v466_v22 }
 0x24e   :  { %v483_v25 = vadd.f32 %v520_v21, %v478_v23 }
 0x24f   :  { %v468_v26 = vmul.f32 %v526_v14, %v467_v24 }
 0x250   :  { %485 = vst [vmem:[#allocation10] sm:$0xff] %v483_v25 }
 0x251   :  { %v472_v27 = vsel %vm471_vm6, %v526_v14, %v468_v26 }
 0x252   :  { %v474_v28 = vmul.f32 %v472_v27, %v442_v1 }
 0x254   :  { %v479_v29 = vmul.f32 %v519_v17, %v474_v28 }
 0x256   :  { %v484_v30 = vadd.f32 %v520_v21, %v479_v29 }
 0x258   :  { %486 = vst [vmem:[#allocation10 + $0x8] sm:$0xff] %v484_v30 }
 0x259   :  { %499 = dma.vmem_to_hbm [thread:$0]  %s492_s5, 256, %s494_s29, [#allocation4], %s659_s13, %s659_s13, %s660_s14  }
 0x25a   :  { %653 = dma.done.wait [#allocation4], 256  }
 0x25b   :  { %654 = vsyncadd [#allocation4], 4294967040 }
 0x25c   :  { %504 = vsyncpa [#allocation3], 1 }
 0x25d   :  { %505 = vsyncpa [#allocation6], 1 }
 0x25e   :  { %506 = vsyncpa [#allocation9], 1 }
 0x25f   :  { %507 = vsyncpa [#allocation4], 1 }

</bundles_post_ra>
